<compile_context>
chip_gen: v5e
topology: v5e:2x2
jax: 0.10.0
libtpu: 0.0.40
codegen_flags: <defaults>
</compile_context>

<pallas_src>
import jax
import jax.numpy as jnp
from jax.experimental import pallas as pl
from jax.experimental.pallas import tpu as pltpu


def _encoder_kernel(x_ref, wc1_ref, b1_ref, wc2_ref, b2_ref, wfc_ref, bfc_ref, out_ref):
    """One batch tile: (features, batch-lanes) layout, three chained MXU matmuls.

    x_ref:   (C_in*L, B_TILE)  input features, rows ordered channel-major (c*L + l).
    wc*_ref: (C_out*L, C_in*L) block-Toeplitz conv matrices (conv + zero padding baked in).
    b*_ref:  (C_out*L, 1)      per-row biases (conv bias repeated over positions).
    wfc_ref: (OUT, C2*L)       PyTorch Linear weight (rows already match flatten order).
    bfc_ref: (OUT, 1)
    out_ref: (OUT, B_TILE)     transposed output -> lane-dense store (batch on lanes).
    """
    # Conv1 + ReLU: single matmul, f32 accumulation, f32 elementwise.
    h = jnp.dot(wc1_ref[...], x_ref[...], preferred_element_type=jnp.float32)
    h = jnp.maximum(h + b1_ref[...], 0.0)

    # Conv2 + ReLU.
    h = jnp.dot(wc2_ref[...], h.astype(wc2_ref.dtype), preferred_element_type=jnp.float32)
    h = jnp.maximum(h + b2_ref[...], 0.0)

    # Flatten is free in this layout (rows are already channel-major features); FC matmul.
    out_ref[...] = (jnp.dot(wfc_ref[...], h.astype(wfc_ref.dtype),
                            preferred_element_type=jnp.float32) + bfc_ref[...])


def _conv1d_matrix(w, L):
    """Bake Conv1d(stride=1, padding=(K-1)//2) into a (C_out*L, C_in*L) block-Toeplitz matrix.

    w: PyTorch-layout Conv1d weight (C_out, C_in, K).
    Result rows/cols are ordered channel-major: index = c*L + l.
    """
    C_out, C_in, K = w.shape
    pad = (K - 1) // 2
    pos = jnp.arange(L)
    wm = jnp.zeros((C_out * L, C_in * L), jnp.float32)
    for k in range(K):
        src = pos + k - pad                                   # input position read by output pos
        valid = (src >= 0) & (src < L)                        # zero padding at the ends
        shift = ((pos[None, :] == src[:, None]) & valid[:, None]).astype(jnp.float32)  # (L, L)
        wm = wm + jnp.kron(w[:, :, k].astype(jnp.float32), shift)
    return wm


def conv_encoder_1d(x, params, *, use_bf16=True):
    """x: (B, C_in, L) float32. params in PyTorch layouts. Returns (B, OUT) float32."""
    w1, b1, w2, b2, wfc, bfc = params
    B, C_in, L = x.shape
    C1 = w1.shape[0]
    C2 = w2.shape[0]
    OUT = wfc.shape[0]
    assert wfc.shape[1] == C2 * L, "LazyLinear in-features must equal C2*L (flattened conv output)"

    # Batch tile: lane dim must be a multiple of 128; target 128-512 lanes per step and keep
    # >=2 grid steps when the batch is big enough (v7x has 2 TensorCores; v5e/v6e have 1).
    B_TILE = 128 * min(4, max(1, -(-B // 256)))
    B_pad = -(-B // B_TILE) * B_TILE

    mm_dtype = jnp.bfloat16 if use_bf16 else jnp.float32

    # Layout plumbing (cheap, wrapper-side XLA): (B, C_in, L) -> (C_in*L, B_pad),
    # rows channel-major (c*L + l), batch on the lane axis.
    xt = jnp.transpose(x, (1, 2, 0)).reshape(C_in * L, B)
    if B_pad != B:
        xt = jnp.pad(xt, ((0, 0), (0, B_pad - B)))
    xt = xt.astype(mm_dtype)

    # One-time weight packing: conv layers as block-Toeplitz matrices, biases expanded per row.
    wc1 = _conv1d_matrix(w1, L).astype(mm_dtype)              # (C1*L, C_in*L)
    wc2 = _conv1d_matrix(w2, L).astype(mm_dtype)              # (C2*L, C1*L)
    b1e = jnp.repeat(b1, L)[:, None].astype(jnp.float32)      # (C1*L, 1)
    b2e = jnp.repeat(b2, L)[:, None].astype(jnp.float32)      # (C2*L, 1)
    wfc_m = wfc.astype(mm_dtype)                               # (OUT, C2*L) — PyTorch layout as-is
    bfc_m = bfc[:, None].astype(jnp.float32)                   # (OUT, 1)

    out_t = pl.pallas_call(
        _encoder_kernel,
        out_shape=jax.ShapeDtypeStruct((OUT, B_pad), jnp.float32),
        grid_spec=pltpu.PrefetchScalarGridSpec(
            num_scalar_prefetch=0,
            grid=(B_pad // B_TILE,),
            in_specs=[
                pl.BlockSpec((C_in * L, B_TILE), lambda i: (0, i)),   # input tile (batch on lanes)
                pl.BlockSpec((C1 * L, C_in * L), lambda i: (0, 0)),   # conv1 Toeplitz weight
                pl.BlockSpec((C1 * L, 1), lambda i: (0, 0)),          # conv1 bias (per row)
                pl.BlockSpec((C2 * L, C1 * L), lambda i: (0, 0)),     # conv2 Toeplitz weight
                pl.BlockSpec((C2 * L, 1), lambda i: (0, 0)),          # conv2 bias (per row)
                pl.BlockSpec((OUT, C2 * L), lambda i: (0, 0)),        # fc weight
                pl.BlockSpec((OUT, 1), lambda i: (0, 0)),             # fc bias
            ],
            out_specs=pl.BlockSpec((OUT, B_TILE), lambda i: (0, i)),  # lane-dense transposed out
        ),
        compiler_params=pltpu.CompilerParams(
            dimension_semantics=("parallel",)),   # batch tiles independent -> v7x megacore
    )(xt, wc1, b1e, wc2, b2e, wfc_m, bfc_m)

    # (OUT, B_pad) -> (B, OUT): tiny wrapper-side transpose of the final output.
    return out_t[:, :B].T


def ref_forward(x, params):
    """Pure-JAX reference mirroring the PyTorch forward (Conv1d+ReLU x2, Flatten, Linear),
    using PyTorch parameter layouts."""
    w1, b1, w2, b2, wfc, bfc = params
    L = x.shape[-1]

    def conv(xin, w, b):
        K = w.shape[-1]
        pad = (K - 1) // 2
        xp = jnp.pad(xin, ((0, 0), (0, 0), (pad, pad)))
        y = sum(
            jnp.einsum("oi,bil->bol", w[:, :, k], xp[:, :, k:k + L],
                       precision=jax.lax.Precision.HIGHEST)
            for k in range(K))
        return jnp.maximum(y + b[None, :, None], 0.0)

    y = conv(x, w1, b1)
    y = conv(y, w2, b2)
    flat = y.reshape(x.shape[0], -1)              # nn.Flatten: channel-major then position
    return flat @ wfc.T + bfc


if __name__ == "__main__":
    # Small shapes consistent with the module: input_dim = [C_in, L], output_dim = OUT.
    B, C_in, L = 2, 4, 16
    C1, C2, K = 8, 8, 3
    OUT = 32

    key = jax.random.PRNGKey(0)
    k_x, k_w1, k_b1, k_w2, k_b2, k_wfc, k_bfc = jax.random.split(key, 7)

    x = jax.random.normal(k_x, (B, C_in, L), dtype=jnp.float32)

    # Deterministic synthetic parameters in PyTorch layouts (so real checkpoints drop in as-is).
    w1 = 0.1 * jax.random.normal(k_w1, (C1, C_in, K), dtype=jnp.float32)
    b1 = 0.1 * jax.random.normal(k_b1, (C1,), dtype=jnp.float32)
    w2 = 0.1 * jax.random.normal(k_w2, (C2, C1, K), dtype=jnp.float32)
    b2 = 0.1 * jax.random.normal(k_b2, (C2,), dtype=jnp.float32)
    wfc = 0.1 * jax.random.normal(k_wfc, (OUT, C2 * L), dtype=jnp.float32)
    bfc = 0.1 * jax.random.normal(k_bfc, (OUT,), dtype=jnp.float32)
    params = (w1, b1, w2, b2, wfc, bfc)

    out = jax.block_until_ready(conv_encoder_1d(x, params))
    ref = jax.block_until_ready(ref_forward(x, params))

    assert out.shape == (B, OUT), out.shape
    # bf16 matmul operands (f32 accumulation) -> slightly looser tolerance than pure f32.
    assert jnp.allclose(out, ref, rtol=2e-2, atol=2e-2), (
        f"max abs err {jnp.max(jnp.abs(out - ref))}")

    print("KERNEL_OK")
</pallas_src>

<mosaic_0001>
module attributes {stable_mosaic.version = 11 : i64} {
  func.func @_encoder_kernel(%arg0: i32, %arg1: memref<64x128xbf16, #tpu.memory_space<vmem>>, %arg2: memref<128x64xbf16, #tpu.memory_space<vmem>>, %arg3: memref<128x1xf32, #tpu.memory_space<vmem>>, %arg4: memref<128x128xbf16, #tpu.memory_space<vmem>>, %arg5: memref<128x1xf32, #tpu.memory_space<vmem>>, %arg6: memref<32x128xbf16, #tpu.memory_space<vmem>>, %arg7: memref<32x1xf32, #tpu.memory_space<vmem>>, %arg8: memref<32x128xf32, #tpu.memory_space<vmem>>) attributes {dimension_semantics = [#tpu.dimension_semantics<parallel>], iteration_bounds = array<i64: 1>, scalar_prefetch = 0 : i64, scratch_operands = 0 : i64, tpu.core_type = #tpu.core_type<tc>, window_params = [{transform_indices = @transform_0, window_bounds = array<i64: 64, 128>}, {pipeline_mode = #tpu.pipeline_mode<synchronous>, transform_indices = @transform_1, window_bounds = array<i64: 128, 64>}, {pipeline_mode = #tpu.pipeline_mode<synchronous>, transform_indices = @transform_2, window_bounds = array<i64: 128, 1>}, {pipeline_mode = #tpu.pipeline_mode<synchronous>, transform_indices = @transform_3, window_bounds = array<i64: 128, 128>}, {pipeline_mode = #tpu.pipeline_mode<synchronous>, transform_indices = @transform_4, window_bounds = array<i64: 128, 1>}, {pipeline_mode = #tpu.pipeline_mode<synchronous>, transform_indices = @transform_5, window_bounds = array<i64: 32, 128>}, {pipeline_mode = #tpu.pipeline_mode<synchronous>, transform_indices = @transform_6, window_bounds = array<i64: 32, 1>}, {transform_indices = @transform_7, window_bounds = array<i64: 32, 128>}]} {
    %c0 = arith.constant 0 : index
    %c0_0 = arith.constant 0 : index
    %0 = vector.load %arg2[%c0, %c0_0] : memref<128x64xbf16, #tpu.memory_space<vmem>>, vector<128x64xbf16>
    %c0_1 = arith.constant 0 : index
    %c0_2 = arith.constant 0 : index
    %1 = vector.load %arg1[%c0_1, %c0_2] : memref<64x128xbf16, #tpu.memory_space<vmem>>, vector<64x128xbf16>
    %cst = arith.constant dense<0.000000e+00> : vector<128x128xf32>
    %2 = tpu.matmul %0, %1, %cst {dimension_numbers = #tpu.dot_dimension_numbers<[1], [0], [0], [1], [0, 0, 1, 1], [], []>} : vector<128x64xbf16>, vector<64x128xbf16>, vector<128x128xf32> -> vector<128x128xf32>
    %c0_3 = arith.constant 0 : index
    %c0_4 = arith.constant 0 : index
    %3 = vector.load %arg3[%c0_3, %c0_4] : memref<128x1xf32, #tpu.memory_space<vmem>>, vector<128x1xf32>
    %4 = vector.broadcast %3 : vector<128x1xf32> to vector<128x128xf32>
    %5 = arith.addf %2, %4 : vector<128x128xf32>
    %cst_5 = arith.constant 0.000000e+00 : f32
    %6 = vector.broadcast %cst_5 : f32 to vector<128x128xf32>
    %7 = arith.maximumf %5, %6 : vector<128x128xf32>
    %c0_6 = arith.constant 0 : index
    %c0_7 = arith.constant 0 : index
    %8 = vector.load %arg4[%c0_6, %c0_7] : memref<128x128xbf16, #tpu.memory_space<vmem>>, vector<128x128xbf16>
    %9 = arith.truncf %7 : vector<128x128xf32> to vector<128x128xbf16>
    %cst_8 = arith.constant dense<0.000000e+00> : vector<128x128xf32>
    %10 = tpu.matmul %8, %9, %cst_8 {dimension_numbers = #tpu.dot_dimension_numbers<[1], [0], [0], [1], [0, 0, 1, 1], [], []>} : vector<128x128xbf16>, vector<128x128xbf16>, vector<128x128xf32> -> vector<128x128xf32>
    %c0_9 = arith.constant 0 : index
    %c0_10 = arith.constant 0 : index
    %11 = vector.load %arg5[%c0_9, %c0_10] : memref<128x1xf32, #tpu.memory_space<vmem>>, vector<128x1xf32>
    %12 = vector.broadcast %11 : vector<128x1xf32> to vector<128x128xf32>
    %13 = arith.addf %10, %12 : vector<128x128xf32>
    %cst_11 = arith.constant 0.000000e+00 : f32
    %14 = vector.broadcast %cst_11 : f32 to vector<128x128xf32>
    %15 = arith.maximumf %13, %14 : vector<128x128xf32>
    %c0_12 = arith.constant 0 : index
    %c0_13 = arith.constant 0 : index
    %16 = vector.load %arg6[%c0_12, %c0_13] : memref<32x128xbf16, #tpu.memory_space<vmem>>, vector<32x128xbf16>
    %17 = arith.truncf %15 : vector<128x128xf32> to vector<128x128xbf16>
    %cst_14 = arith.constant dense<0.000000e+00> : vector<32x128xf32>
    %18 = tpu.matmul %16, %17, %cst_14 {dimension_numbers = #tpu.dot_dimension_numbers<[1], [0], [0], [1], [0, 0, 1, 1], [], []>} : vector<32x128xbf16>, vector<128x128xbf16>, vector<32x128xf32> -> vector<32x128xf32>
    %c0_15 = arith.constant 0 : index
    %c0_16 = arith.constant 0 : index
    %19 = vector.load %arg7[%c0_15, %c0_16] : memref<32x1xf32, #tpu.memory_space<vmem>>, vector<32x1xf32>
    %20 = vector.broadcast %19 : vector<32x1xf32> to vector<32x128xf32>
    %21 = arith.addf %18, %20 : vector<32x128xf32>
    %c0_17 = arith.constant 0 : index
    %c0_18 = arith.constant 0 : index
    %22 = vector.load %arg8[%c0_17, %c0_18] : memref<32x128xf32, #tpu.memory_space<vmem>>, vector<32x128xf32>
    tpu.vector_store %arg8[%c0_17, %c0_18], %21 {strides = array<i32>} : memref<32x128xf32, #tpu.memory_space<vmem>>, vector<32x128xf32>,
    return
  }
  func.func @transform_0(%arg0: i32) -> (i32, i32) {
    %c0_i32 = arith.constant 0 : i32
    %c0_i32_0 = arith.constant 0 : i32
    return %c0_i32, %arg0 : i32, i32
  }
  func.func @transform_1(%arg0: i32) -> (i32, i32) {
    %c0_i32 = arith.constant 0 : i32
    %c0_i32_0 = arith.constant 0 : i32
    %c0_i32_1 = arith.constant 0 : i32
    return %c0_i32, %c0_i32_0 : i32, i32
  }
  func.func @transform_2(%arg0: i32) -> (i32, i32) {
    %c0_i32 = arith.constant 0 : i32
    %c0_i32_0 = arith.constant 0 : i32
    %c0_i32_1 = arith.constant 0 : i32
    return %c0_i32, %c0_i32_0 : i32, i32
  }
  func.func @transform_3(%arg0: i32) -> (i32, i32) {
    %c0_i32 = arith.constant 0 : i32
    %c0_i32_0 = arith.constant 0 : i32
    %c0_i32_1 = arith.constant 0 : i32
    return %c0_i32, %c0_i32_0 : i32, i32
  }
  func.func @transform_4(%arg0: i32) -> (i32, i32) {
    %c0_i32 = arith.constant 0 : i32
    %c0_i32_0 = arith.constant 0 : i32
    %c0_i32_1 = arith.constant 0 : i32
    return %c0_i32, %c0_i32_0 : i32, i32
  }
  func.func @transform_5(%arg0: i32) -> (i32, i32) {
    %c0_i32 = arith.constant 0 : i32
    %c0_i32_0 = arith.constant 0 : i32
    %c0_i32_1 = arith.constant 0 : i32
    return %c0_i32, %c0_i32_0 : i32, i32
  }
  func.func @transform_6(%arg0: i32) -> (i32, i32) {
    %c0_i32 = arith.constant 0 : i32
    %c0_i32_0 = arith.constant 0 : i32
    %c0_i32_1 = arith.constant 0 : i32
    return %c0_i32, %c0_i32_0 : i32, i32
  }
  func.func @transform_7(%arg0: i32) -> (i32, i32) {
    %c0_i32 = arith.constant 0 : i32
    %c0_i32_0 = arith.constant 0 : i32
    return %c0_i32, %arg0 : i32, i32
  }
}

</mosaic_0001>

<bundles_post_ra>
// kernel: tpu_custom_call.1
= control target key start
LH: loop header
LB: loop body
LE: loop exit
PB: predicated region body
PF: predicated region fallthrough
CT: control target
= control target key end

     0   :  { %v787_v3 = vmov 0   ;;  %s1029_s0 = inlined_call_operand.vmem [shape: bf16[64,128], index: 0, kind: input, shape index: {}]   ;;  %s1030_s1 = inlined_call_operand.vmem [shape: bf16[128,64], index: 1, kind: input, shape index: {}]   ;;  %s1031_s2 = inlined_call_operand.vmem [shape: f32[128,1], index: 2, kind: input, shape index: {}]   ;;  %s1032_s3 = inlined_call_operand.vmem [shape: bf16[128,128], index: 3, kind: input, shape index: {}]   ;;  %s1033_s4 = inlined_call_operand.vmem [shape: f32[128,1], index: 4, kind: input, shape index: {}]   ;;  %s1034_s5 = inlined_call_operand.vmem [shape: bf16[32,128], index: 5, kind: input, shape index: {}]   ;;  %s1035_s6 = inlined_call_operand.vmem [shape: f32[32,1], index: 6, kind: input, shape index: {}]   ;;  %s1036_s7 = inlined_call_operand.hbm [shape: f32[32,128], index: 7, kind: output, shape index: {}]  }
   0x1   :  { %v66_v0 = vld [vmem:[%s1031_s2 + $0x70] sm:$0xff]  ;;  %v64_v1 = vld [vmem:[%s1031_s2 + $0x60] sm:$0xff]  ;;  %v731_v2 = vld [vmem:[%s1029_s0 + $0x18] sm:$0xff]  ;;  %759 = vset.pattern.permute.xlu1 %v787_v3  ;;  %758 = vset.pattern.permute.xlu0 %v787_v3 }
   0x2   :  { %140 = vperm.xlu0 %758, %v66_v0   ;;  %130 = vperm.xlu1 %759, %v64_v1   ;;  %v730_v4 = vld [vmem:[%s1029_s0 + $0x10] sm:$0xff]  ;;  %v67_v6 = vld [vmem:[%s1031_s2 + $0x78] sm:$0xff]  ;;  %v65_v7 = vld [vmem:[%s1031_s2 + $0x68] sm:$0xff] }
   0x3   :  { %241 = vmatpush.bf16.msra.mxu0 %v731_v2  ;;  %742 = vmatpush.bf16.msra.mxu2 %v731_v2  ;;  %v62_v5 = vld [vmem:[%s1031_s2 + $0x50] sm:$0xff]  ;;  %v729_v8 = vld [vmem:[%s1029_s0 + $0x8] sm:$0xff] }
   0x4   :  { %760 = vset.pattern.permute.xlu2 %v787_v3 }
   0x5   :  { %120 = vperm.xlu2 %760, %v62_v5  }
   0x7   :  { %242 = vmatpush.bf16.msra.mxu0 %v730_v4  ;;  %743 = vmatpush.bf16.msra.mxu2 %v730_v4 }
   0x8   :  { %12 = vsyncpa [#allocation3], 0  ;;  %v63_v9 = vld [vmem:[%s1031_s2 + $0x58] sm:$0xff]  ;;  %v728_v10 = vld [vmem:[%s1029_s0] sm:$0xff]  ;;  %vm212_vm0 = vcmask 523264   ;;  %s788_s14 = smov [#allocation2]  }
   0x9   :  { %v61_v11 = vld [vmem:[%s1031_s2 + $0x48] sm:$0xff]  ;;  %v60_v12 = vld [vmem:[%s1031_s2 + $0x40] sm:$0xff]  ;;  %v58_v15 = vld [vmem:[%s1031_s2 + $0x30] sm:$0xff]  ;;  %s610_s15 = sshll.u32 %s788_s14, 4  ;;  %s612_s18 = sshll.u32 %s1036_s7, 4  ;;  %s611_s15 = int_to_ptr.vmem [resolvable:$true] %s610_s15  ;;  %s613_s18 = int_to_ptr.hbm [resolvable:$true] %s612_s18 }
   0xa   :  { %145 = vperm.xlu0 %758, %v67_v6   ;;  %135 = vperm.xlu1 %759, %v65_v7   ;;  %v720_v13 = vld [vmem:[%s1030_s1] sm:$0xff]  ;;  %v725_v14 = vld [vmem:[%s1030_s1 + $0x28] sm:$0xff]  ;;  %v59_v16 = vld [vmem:[%s1031_s2 + $0x38] sm:$0xff]  ;;  %s790_s19 = smov 8  }
   0xb   :  { %243 = vmatpush.bf16.msra.mxu0 %v729_v8  ;;  %744 = vmatpush.bf16.msra.mxu2 %v729_v8  ;;  %v56_v17 = vld [vmem:[%s1031_s2 + $0x20] sm:$0xff]  ;;  %v57_v18 = vld [vmem:[%s1031_s2 + $0x28] sm:$0xff]  ;;  %v55_v19 = vld [vmem:[%s1031_s2 + $0x18] sm:$0xff] }
   0xc   :  { %v54_v20 = vld [vmem:[%s1031_s2 + $0x10] sm:$0xff]  ;;  %v721_v21 = vld [vmem:[%s1030_s1 + $0x8] sm:$0xff]  ;;  %v52_v23 = vld [vmem:[%s1031_s2] sm:$0xff] }
   0xd   :  { %125 = vperm.xlu2 %760, %v63_v9   ;;  %v726_v22 = vld [vmem:[%s1030_s1 + $0x30] sm:$0xff]  ;;  %v53_v25 = vld [vmem:[%s1031_s2 + $0x8] sm:$0xff]  ;;  %v341_v26 = vld [vmem:[%s1033_s4 + $0x78] sm:$0xff] }
   0xe   :  { %v340_v24 = vld [vmem:[%s1033_s4 + $0x70] sm:$0xff]  ;;  %v339_v27 = vld [vmem:[%s1033_s4 + $0x68] sm:$0xff]  ;;  %v338_v28 = vld [vmem:[%s1033_s4 + $0x60] sm:$0xff] }
   0xf   :  { %244 = vmatpush.bf16.msra.mxu0 %v728_v10  ;;  %745 = vmatpush.bf16.msra.mxu2 %v728_v10  ;;  %v722_v29 = vld [vmem:[%s1030_s1 + $0x10] sm:$0xff]  ;;  %v727_v30 = vld [vmem:[%s1030_s1 + $0x38] sm:$0xff]  ;;  %v334_v32 = vld [vmem:[%s1033_s4 + $0x40] sm:$0xff] }
  0x10   :  { %v336_v31 = vld [vmem:[%s1033_s4 + $0x50] sm:$0xff]  ;;  %v337_v33 = vld [vmem:[%s1033_s4 + $0x58] sm:$0xff]  ;;  %v335_v34 = vld [vmem:[%s1033_s4 + $0x48] sm:$0xff] }
  0x11   :  { %v333_v35 = vld [vmem:[%s1033_s4 + $0x38] sm:$0xff]  ;;  %v332_v36 = vld [vmem:[%s1033_s4 + $0x30] sm:$0xff]  ;;  %v330_v38 = vld [vmem:[%s1033_s4 + $0x20] sm:$0xff] }
  0x12   :  { %115 = vperm.xlu1 %759, %v61_v11   ;;  %110 = vperm.xlu0 %758, %v60_v12   ;;  %v723_v37 = vld [vmem:[%s1030_s1 + $0x18] sm:$0xff]  ;;  %v328_v39 = vld [vmem:[%s1033_s4 + $0x10] sm:$0xff]  ;;  %v331_v40 = vld [vmem:[%s1033_s4 + $0x28] sm:$0xff] }
  0x13   :  { %672 = vmatmul.msk.bf16.vlgmr.msra.gmra.mxu0 %vm212_vm0, %v720_v13  ;;  %677 = vmatmul.msk.bf16.vlgmr.msra.gmra.mxu2 %vm212_vm0, %v725_v14  ;;  %v329_v41 = vld [vmem:[%s1033_s4 + $0x18] sm:$0xff]  ;;  %v327_v42 = vld [vmem:[%s1033_s4 + $0x8] sm:$0xff]  ;;  %v326_v43 = vld [vmem:[%s1033_s4] sm:$0xff] }
  0x14   :  { %v724_v44 = vld [vmem:[%s1030_s1 + $0x20] sm:$0xff]  ;;  %v549_v46 = vld [vmem:[%s1035_s6 + $0x10] sm:$0xff]  ;;  %v548_v47 = vld [vmem:[%s1035_s6 + $0x8] sm:$0xff] }
  0x15   :  { %100 = vperm.xlu2 %760, %v58_v15   ;;  %v547_v45 = vld [vmem:[%s1035_s6] sm:$0xff]  ;;  %v550_v48 = vld [vmem:[%s1035_s6 + $0x18] sm:$0xff] }
  0x1a   :  { %105 = vperm.xlu0 %758, %v59_v16   ;;  %90 = vperm.xlu1 %759, %v56_v17  }
  0x1d   :  { %95 = vperm.xlu2 %760, %v57_v18  }
  0x22   :  { %85 = vperm.xlu1 %759, %v55_v19   ;;  %80 = vperm.xlu0 %758, %v54_v20  }
  0x23   :  { %673 = vmatmul.msk.bf16.gmra.mxu0 %vm212_vm0, %v721_v21  ;;  %678 = vmatmul.msk.bf16.gmra.mxu2 %vm212_vm0, %v726_v22 }
  0x25   :  { %70 = vperm.xlu2 %760, %v52_v23  }
  0x2a   :  { %414 = vperm.xlu1 %759, %v340_v24   ;;  %75 = vperm.xlu0 %758, %v53_v25  }
  0x2d   :  { %419 = vperm.xlu2 %760, %v341_v26  }
  0x32   :  { %409 = vperm.xlu1 %759, %v339_v27   ;;  %404 = vperm.xlu0 %758, %v338_v28  }
  0x33   :  { %674 = vmatmul.msk.bf16.gmra.mxu0 %vm212_vm0, %v722_v29  ;;  %679 = vmatmul.msk.bf16.gmra.mxu2 %vm212_vm0, %v727_v30 }
  0x35   :  { %394 = vperm.xlu2 %760, %v336_v31  }
  0x3a   :  { %384 = vperm.xlu1 %759, %v334_v32   ;;  %399 = vperm.xlu0 %758, %v337_v33  }
  0x3d   :  { %389 = vperm.xlu2 %760, %v335_v34  }
  0x42   :  { %379 = vperm.xlu1 %759, %v333_v35   ;;  %374 = vperm.xlu0 %758, %v332_v36  }
  0x43   :  { %675 = vmatmul.msk.bf16.gmra.mxu0 %vm212_vm0, %v723_v37 }
  0x45   :  { %364 = vperm.xlu2 %760, %v330_v38  }
  0x4a   :  { %354 = vperm.xlu1 %759, %v328_v39   ;;  %369 = vperm.xlu0 %758, %v331_v40  }
  0x4d   :  { %359 = vperm.xlu2 %760, %v329_v41  }
  0x52   :  { %349 = vperm.xlu1 %759, %v327_v42   ;;  %344 = vperm.xlu0 %758, %v326_v43  }
  0x53   :  { %676 = vmatmul.msk.bf16.gmra.mxu0 %vm212_vm0, %v724_v44 }
  0x55   :  { %553 = vperm.xlu2 %760, %v547_v45  }
  0x5a   :  { %563 = vperm.xlu1 %759, %v549_v46   ;;  %558 = vperm.xlu0 %758, %v548_v47  }
  0x5d   :  { %568 = vperm.xlu2 %760, %v550_v48  }
  0x5f   :  { %v121_v49 = vpop.permute.xlu2 %120 }
  0x67   :  { %v126_v51 = vpop.permute.xlu2 %125 }
  0x6f   :  { %v101_v53 = vpop.permute.xlu2 %100 }
  0x74   :  { %v141_v50 = vpop.permute.xlu0 %140  ;;  %v131_v10 = vpop.permute.xlu1 %130 }
  0x77   :  { %v96_v56 = vpop.permute.xlu2 %95 }
  0x7c   :  { %v146_v52 = vpop.permute.xlu0 %145  ;;  %v136_v14 = vpop.permute.xlu1 %135 }
  0x7f   :  { %v71_v60 = vpop.permute.xlu2 %70 }
  0x84   :  { %v111_v54 = vpop.permute.xlu0 %110  ;;  %v116_v32 = vpop.permute.xlu1 %115 }
  0x8c   :  { %v106_v55 = vpop.permute.xlu0 %105  ;;  %v91_v34 = vpop.permute.xlu1 %90 }
  0x90   :  { %v246_v57 = vpop.f32.mrf.mxu0 }
  0x91   :  { %v247_v62 = vadd.f32 %v246_v57, %v71_v60  ;;  %v732_v57 = vld [vmem:[%s1032_s3] sm:$0xff]  ;;  %v737_v60 = vld [vmem:[%s1032_s3 + $0x28] sm:$0xff] }
  0x93   :  { %v286_v2 = vmax.f32 %v247_v62, 0.0  ;;  %v738_v62 = vld [vmem:[%s1032_s3 + $0x30] sm:$0xff] }
  0x94   :  { %v983_v58 = vpop.permute.xlu0 %80  ;;  %v86_v47 = vpop.permute.xlu1 %85 }
  0x96   :  { %v271_v59 = vpop.f32.mrf.mxu2 }
  0x97   :  { %v272_v22 = vadd.f32 %v271_v59, %v121_v49  ;;  %v736_v59 = vld [vmem:[%s1032_s3 + $0x20] sm:$0xff] }
  0x98   :  { %v248_v61 = vpop.f32.mrf.mxu0 }
  0x99   :  { %v296_v27 = vmax.f32 %v272_v22, 0.0 }
  0x9c   :  { %v76_v63 = vpop.permute.xlu0 %75 }
  0x9d   :  { %v249_v0 = vadd.f32 %v248_v61, %v76_v63  ;;  %v734_v61 = vld [vmem:[%s1032_s3 + $0x10] sm:$0xff]  ;;  %v735_v63 = vld [vmem:[%s1032_s3 + $0x18] sm:$0xff] }
  0x9e   :  { %v273_v1 = vpop.f32.mrf.mxu2 }
  0x9f   :  { %v287_v3 = vmax.f32 %v249_v0, 0.0  ;;  %v274_v23 = vadd.f32 %v273_v1, %v126_v51  ;;  %v739_v0 = vld [vmem:[%s1032_s3 + $0x38] sm:$0xff] }
  0xa0   :  { %v251_v4 = vpop.f32.mrf.mxu0 }
  0xa1   :  { %v985_v5 = vpack.c.bf16 %v287_v3, %v286_v2  ;;  %v297_v28 = vmax.f32 %v274_v23, 0.0  ;;  %v252_v51 = vadd.f32 %v251_v4, %v983_v58  ;;  %v733_v58 = vld [vmem:[%s1032_s3 + $0x8] sm:$0xff] }
  0xa3   :  { %v323_v31 = vpack.c.bf16 %v297_v28, %v296_v27 }
  0xa6   :  { %v276_v6 = vpop.f32.mrf.mxu2 }
  0xa7   :  { %v277_v16 = vadd.f32 %v276_v6, %v131_v10 }
  0xa8   :  { %v253_v7 = vpop.f32.mrf.mxu0 }
  0xa9   :  { %v298_v24 = vmax.f32 %v277_v16, 0.0  ;;  %v254_v48 = vadd.f32 %v253_v7, %v86_v47 }
  0xae   :  { %v278_v8 = vpop.f32.mrf.mxu2 }
  0xaf   :  { %v279_v17 = vadd.f32 %v278_v8, %v136_v14 }
  0xb0   :  { %v256_v9 = vpop.f32.mrf.mxu0 }
  0xb1   :  { %v299_v25 = vmax.f32 %v279_v17, 0.0  ;;  %v257_v45 = vadd.f32 %v256_v9, %v91_v34  ;;  %v415_v9 = vpop.permute.xlu1 %414 }
  0xb3   :  { %v324_v29 = vpack.c.bf16 %v299_v25, %v298_v24 }
  0xb6   :  { %v281_v11 = vpop.f32.mrf.mxu2 }
  0xb7   :  { %v282_v13 = vadd.f32 %v281_v11, %v141_v50  ;;  %v420_v11 = vpop.permute.xlu2 %419 }
  0xb8   :  { %v258_v12 = vpop.f32.mrf.mxu0 }
  0xb9   :  { %v300_v18 = vmax.f32 %v282_v13, 0.0  ;;  %v259_v42 = vadd.f32 %v258_v12, %v96_v56  ;;  %v410_v13 = vpop.permute.xlu1 %409 }
  0xbb   :  { %v291_v49 = vmax.f32 %v259_v42, 0.0 }
  0xbe   :  { %v283_v15 = vpop.f32.mrf.mxu2 }
  0xbf   :  { %v284_v19 = vadd.f32 %v283_v15, %v146_v52  ;;  %v290_v52 = vmax.f32 %v257_v45, 0.0  ;;  %v405_v15 = vpop.permute.xlu0 %404  ;;  %v395_v16 = vpop.permute.xlu2 %394 }
  0xc0   :  { %v261_v20 = vpop.f32.mrf.mxu0 }
  0xc1   :  { %v301_v21 = vmax.f32 %v284_v19, 0.0  ;;  %v262_v39 = vadd.f32 %v261_v20, %v101_v53  ;;  %v320_v53 = vpack.c.bf16 %v291_v49, %v290_v52  ;;  %v385_v19 = vpop.permute.xlu1 %384 }
  0xc3   :  { %v325_v26 = vpack.c.bf16 %v301_v21, %v300_v18  ;;  %v292_v46 = vmax.f32 %v262_v39, 0.0 }
  0xc5   :  { %470 = vmatpush.bf16.msra.mxu1 %v325_v26  ;;  %746 = vmatpush.bf16.msra.mxu3 %v325_v26 }
  0xc7   :  { %v400_v20 = vpop.permute.xlu0 %399  ;;  %v390_v21 = vpop.permute.xlu2 %389 }
  0xc8   :  { %v263_v30 = vpop.f32.mrf.mxu0 }
  0xc9   :  { %471 = vmatpush.bf16.msra.mxu1 %v324_v29  ;;  %747 = vmatpush.bf16.msra.mxu3 %v324_v29  ;;  %v264_v37 = vadd.f32 %v263_v30, %v106_v55  ;;  %v288_v55 = vmax.f32 %v252_v51, 0.0  ;;  %v380_v30 = vpop.permute.xlu1 %379 }
  0xcb   :  { %v293_v43 = vmax.f32 %v264_v37, 0.0 }
  0xcd   :  { %472 = vmatpush.bf16.msra.mxu1 %v323_v31  ;;  %748 = vmatpush.bf16.msra.mxu3 %v323_v31  ;;  %v321_v50 = vpack.c.bf16 %v293_v43, %v292_v46 }
  0xcf   :  { %v375_v34 = vpop.permute.xlu0 %374 }
  0xd0   :  { %v266_v33 = vpop.f32.mrf.mxu0 }
  0xd1   :  { %v267_v35 = vadd.f32 %v266_v33, %v111_v54  ;;  %v289_v54 = vmax.f32 %v254_v48, 0.0  ;;  %v355_v47 = vpop.permute.xlu1 %354 }
  0xd3   :  { %v294_v40 = vmax.f32 %v267_v35, 0.0  ;;  %v319_v56 = vpack.c.bf16 %v289_v54, %v288_v55 }
  0xd8   :  { %v268_v36 = vpop.f32.mrf.mxu0 }
  0xd9   :  { %v269_v38 = vadd.f32 %v268_v36, %v116_v32 }
  0xdb   :  { %v295_v41 = vmax.f32 %v269_v38, 0.0 }
  0xdd   :  { %v322_v44 = vpack.c.bf16 %v295_v41, %v294_v40  ;;  %v365_v40 = vpop.permute.xlu2 %364 }
  0xdf   :  { %473 = vmatpush.bf16.msra.mxu1 %v322_v44  ;;  %749 = vmatpush.bf16.msra.mxu3 %v322_v44 }
  0xe3   :  { %474 = vmatpush.bf16.msra.mxu1 %v321_v50  ;;  %750 = vmatpush.bf16.msra.mxu3 %v321_v50  ;;  %v370_v50 = vpop.permute.xlu0 %369 }
  0xe7   :  { %475 = vmatpush.bf16.msra.mxu1 %v320_v53  ;;  %751 = vmatpush.bf16.msra.mxu3 %v320_v53 }
  0xeb   :  { %476 = vmatpush.bf16.msra.mxu1 %v319_v56  ;;  %752 = vmatpush.bf16.msra.mxu3 %v319_v56  ;;  %v360_v56 = vpop.permute.xlu2 %359 }
  0xef   :  { %477 = vmatpush.bf16.msra.mxu1 %v985_v5  ;;  %753 = vmatpush.bf16.msra.mxu3 %v985_v5 }
  0xf2   :  { %478 = vmatmul.bf16.vlgmr.msra.gmra.mxu1 %v732_v57  ;;  %498 = vmatmul.bf16.vlgmr.msra.gmra.mxu3 %v736_v59 }
 0x102   :  { %483 = vmatmul.bf16.gmra.mxu1 %v733_v58  ;;  %503 = vmatmul.bf16.gmra.mxu3 %v737_v60 }
 0x112   :  { %488 = vmatmul.bf16.gmra.mxu1 %v734_v61  ;;  %508 = vmatmul.bf16.gmra.mxu3 %v738_v62  ;;  %v350_v62 = vpop.permute.xlu1 %349 }
 0x122   :  { %493 = vmatmul.bf16.gmra.mxu1 %v735_v63  ;;  %513 = vmatmul.bf16.gmra.mxu3 %v739_v0 }
 0x16f   :  { %v1014_v1 = vpop.f32.mrf.mxu1 }
 0x175   :  { %v499_v2 = vpop.f32.mrf.mxu3 }
 0x176   :  { %v500_v42 = vadd.f32 %v499_v2, %v385_v19 }
 0x177   :  { %v1016_v3 = vpop.f32.mrf.mxu1 }
 0x178   :  { %v527_v48 = vmax.f32 %v500_v42, 0.0  ;;  %v482_v63 = vadd.f32 %v1016_v3, %v350_v62  ;;  %v741_v3 = vld [vmem:[%s1034_s5 + $0x8] sm:$0xff] }
 0x17d   :  { %v501_v4 = vpop.f32.mrf.mxu3 }
 0x17e   :  { %v502_v37 = vadd.f32 %v501_v4, %v390_v21  ;;  %v345_v4 = vpop.permute.xlu0 %344 }
 0x17f   :  { %v484_v5 = vpop.f32.mrf.mxu1 }
 0x180   :  { %v528_v44 = vmax.f32 %v502_v37, 0.0  ;;  %v485_v60 = vadd.f32 %v484_v5, %v355_v47  ;;  %v740_v5 = vld [vmem:[%s1034_s5] sm:$0xff]  ;;  %s789_s5 = smov 128  }
 0x182   :  { %v543_v54 = vpack.c.bf16 %v528_v44, %v527_v48 }
 0x185   :  { %v504_v6 = vpop.f32.mrf.mxu3 }
 0x186   :  { %v505_v35 = vadd.f32 %v504_v6, %v395_v16  ;;  %v480_v6 = vadd.f32 %v1014_v1, %v345_v4 }
 0x187   :  { %v486_v8 = vpop.f32.mrf.mxu1 }
 0x188   :  { %v529_v43 = vmax.f32 %v505_v35, 0.0  ;;  %v487_v57 = vadd.f32 %v486_v8, %v360_v56 }
 0x18a   :  { %v522_v0 = vmax.f32 %v487_v57, 0.0 }
 0x18d   :  { %v506_v7 = vpop.f32.mrf.mxu3 }
 0x18e   :  { %v507_v31 = vadd.f32 %v506_v7, %v400_v20  ;;  %v521_v7 = vmax.f32 %v485_v60, 0.0 }
 0x18f   :  { %v489_v12 = vpop.f32.mrf.mxu1 }
 0x190   :  { %v530_v38 = vmax.f32 %v507_v31, 0.0  ;;  %v490_v53 = vadd.f32 %v489_v12, %v365_v40  ;;  %v554_v12 = vpop.permute.xlu2 %553 }
 0x192   :  { %v544_v46 = vpack.c.bf16 %v530_v38, %v529_v43  ;;  %v523_v61 = vmax.f32 %v490_v53, 0.0 }
 0x195   :  { %v509_v10 = vpop.f32.mrf.mxu3 }
 0x196   :  { %v510_v27 = vadd.f32 %v509_v10, %v405_v15  ;;  %v540_v10 = vpack.c.bf16 %v522_v0, %v521_v7 }
 0x197   :  { %v491_v17 = vpop.f32.mrf.mxu1 }
 0x198   :  { %v531_v36 = vmax.f32 %v510_v27, 0.0  ;;  %v492_v51 = vadd.f32 %v491_v17, %v370_v50  ;;  %v564_v17 = vpop.permute.xlu1 %563  ;;  %v569_v20 = vpop.permute.xlu2 %568 }
 0x19a   :  { %v524_v59 = vmax.f32 %v492_v51, 0.0 }
 0x19c   :  { %v541_v2 = vpack.c.bf16 %v524_v59, %v523_v61 }
 0x19d   :  { %v511_v14 = vpop.f32.mrf.mxu3 }
 0x19e   :  { %v512_v25 = vadd.f32 %v511_v14, %v410_v13  ;;  %v559_v14 = vpop.permute.xlu0 %558 }
 0x19f   :  { %v494_v23 = vpop.f32.mrf.mxu1 }
 0x1a0   :  { %v532_v32 = vmax.f32 %v512_v25, 0.0  ;;  %v495_v49 = vadd.f32 %v494_v23, %v375_v34 }
 0x1a2   :  { %v545_v39 = vpack.c.bf16 %v532_v32, %v531_v36  ;;  %v525_v55 = vmax.f32 %v495_v49, 0.0 }
 0x1a5   :  { %v514_v18 = vpop.f32.mrf.mxu3 }
 0x1a6   :  { %v515_v22 = vadd.f32 %v514_v18, %v415_v9  ;;  %v520_v9 = vmax.f32 %v482_v63, 0.0 }
 0x1a7   :  { %v496_v41 = vpop.f32.mrf.mxu1 }
 0x1a8   :  { %v533_v28 = vmax.f32 %v515_v22, 0.0  ;;  %v497_v45 = vadd.f32 %v496_v41, %v380_v30 }
 0x1aa   :  { %v526_v52 = vmax.f32 %v497_v45, 0.0 }
 0x1ac   :  { %v542_v58 = vpack.c.bf16 %v526_v52, %v525_v55 }
 0x1ad   :  { %v516_v24 = vpop.f32.mrf.mxu3 }
 0x1ae   :  { %v517_v26 = vadd.f32 %v516_v24, %v420_v11  ;;  %v519_v11 = vmax.f32 %v480_v6, 0.0 }
 0x1b0   :  { %v534_v29 = vmax.f32 %v517_v26, 0.0  ;;  %v539_v8 = vpack.c.bf16 %v520_v9, %v519_v11 }
 0x1b2   :  { %v546_v33 = vpack.c.bf16 %v534_v29, %v533_v28 }
 0x1b4   :  { %583 = vmatpush.bf16.msrb.mxu2 %v546_v33 }
 0x1b8   :  { %584 = vmatpush.bf16.msrb.mxu2 %v545_v39 }
 0x1bc   :  { %585 = vmatpush.bf16.msrb.mxu2 %v544_v46 }
 0x1c0   :  { %586 = vmatpush.bf16.msrb.mxu2 %v543_v54 }
 0x1c4   :  { %587 = vmatpush.bf16.msrb.mxu2 %v542_v58 }
 0x1c8   :  { %588 = vmatpush.bf16.msrb.mxu2 %v541_v2 }
 0x1cc   :  { %589 = vmatpush.bf16.msrb.mxu2 %v540_v10 }
 0x1d0   :  { %590 = vmatpush.bf16.msrb.mxu2 %v539_v8 }
 0x1d3   :  { %591 = vmatmul.bf16.vlgmr.msrb.gmra.mxu2 %v740_v5 }
 0x1e3   :  { %596 = vmatmul.bf16.gmra.mxu2 %v741_v3 }
 0x256   :  { %v592_v1 = vpop.f32.mrf.mxu2 }
 0x257   :  { %v593_v13 = vadd.f32 %v592_v1, %v554_v12 }
 0x259   :  { %602 = vst [vmem:[#allocation2] sm:$0xff] %v593_v13 }
 0x25e   :  { %v594_v15 = vpop.f32.mrf.mxu2 }
 0x25f   :  { %v595_v16 = vadd.f32 %v594_v15, %v559_v14 }
 0x261   :  { %603 = vst [vmem:[#allocation2 + $0x8] sm:$0xff] %v595_v16 }
 0x266   :  { %v597_v18 = vpop.f32.mrf.mxu2 }
 0x267   :  { %v598_v19 = vadd.f32 %v597_v18, %v564_v17 }
 0x269   :  { %604 = vst [vmem:[#allocation2 + $0x10] sm:$0xff] %v598_v19 }
 0x26e   :  { %v599_v21 = vpop.f32.mrf.mxu2 }
 0x26f   :  { %v600_v22 = vadd.f32 %v599_v21, %v569_v20 }
 0x271   :  { %605 = vst [vmem:[#allocation2 + $0x18] sm:$0xff] %v600_v22 }
 0x272   :  { %618 = dma.vmem_to_hbm [thread:$0]  %s611_s15, 512, %s613_s18, [#allocation3], %s789_s5, %s789_s5, %s790_s19  }
 0x273   :  { %785 = dma.done.wait [#allocation3], 512  }
 0x274   :  { %786 = vsyncadd [#allocation3], 4294966784 }
 0x275   :  { %623 = vsyncpa [#allocation3], 1 }

</bundles_post_ra>
